<compile_context>
chip_gen: v6e
topology: v6e:2x2x1
jax: 0.10.0
libtpu: 0.0.40
codegen_flags: <defaults>
</compile_context>

<pallas_src>
import jax
import jax.numpy as jnp
from jax.experimental import pallas as pl
from jax.experimental.pallas import tpu as pltpu


def _round_up(n, m):
    return ((n + m - 1) // m) * m


def _expand_block_diag(w, g):
    """PyTorch-layout weight (out, in) -> (g*in, g*out) block-diagonal matrix.

    Diagonal block h is w.T, so a row vector holding g samples interleaved as
    [s0f0..s0f3, s1f0, ...] maps to the g samples' outputs interleaved as
    [s0o0..s0o{out-1}, s1o0, ...].
    """
    o, i = w.shape
    eye = jnp.eye(g, dtype=w.dtype)
    return jnp.einsum("gh,ba->gahb", eye, w).reshape(g * i, g * o)


def _expand_bias(b, g):
    return jnp.tile(b.reshape(-1), g).reshape(1, -1)


def _mlp_kernel(x_ref, w1_ref, b1_ref, w2_ref, b2_ref, w3_ref, b3_ref, o_ref):
    """One batch tile, fully in the interleaved (row = 32 samples) layout.

    x_ref : (TR, 128) f32      -- 32 samples x 4 features per row (lane-dense)
    w*_ref: block-diagonal expanded weights (bf16), VMEM-resident
    b*_ref: (1, 32*out) f32
    o_ref : (TR, 96)  f32      -- 32 samples x 3 logits per row (lane-dense)
    """
    mm = w1_ref.dtype  # matmul-input dtype (bf16 by default): the block-diagonal
                       # matmuls do 32x redundant MACs, so MXU rate matters here.
    x = x_ref[...].astype(mm)
    h = jnp.dot(x, w1_ref[...], preferred_element_type=jnp.float32) + b1_ref[...]
    h = jnp.maximum(h, 0.0)                                   # bias + ReLU in f32
    h = jnp.dot(h.astype(mm), w2_ref[...], preferred_element_type=jnp.float32) + b2_ref[...]
    h = jnp.maximum(h, 0.0)
    o_ref[...] = (jnp.dot(h.astype(mm), w3_ref[...],
                          preferred_element_type=jnp.float32) + b3_ref[...])


def ann_forward(x, params, *, matmul_dtype=jnp.bfloat16,
                max_rows_per_tile=2048, min_steps=8):
    """Forward pass of AnnModel. x: (B, inp_feats) f32 -> (B, out_feats) f32 logits."""
    w1, b1, w2, b2, w3, b3 = (params[k] for k in ("w1", "b1", "w2", "b2", "w3", "b3"))
    B, F = x.shape
    h1, h2, out_feats = w1.shape[0], w2.shape[0], w3.shape[0]
    if 128 % F != 0:
        # TODO(synk): generalize sample grouping to feature counts not dividing 128.
        raise ValueError(f"inp_feats={F} must divide the 128-lane width")
    g = 128 // F                           # samples per grouped row (32 for F=4)
    gf, gh1, gh2, go = g * F, g * h1, g * h2, g * out_feats

    # --- zero-copy layout: (B, F) --(pad to g only if needed)--(free reshape)--> (rows, 128)
    x = x.astype(jnp.float32)
    Bp = _round_up(B, g)
    if Bp != B:                            # copies only when B is not a multiple of g
        x = jnp.pad(x, ((0, Bp - B), (0, 0)))
    rows = Bp // g
    xg = x.reshape(rows, gf)               # contiguous view: no extra HBM pass

    # --- tiny block-diagonal expanded weights / tiled biases (VMEM-resident) ---
    w1e = _expand_block_diag(w1.astype(jnp.float32), g).astype(matmul_dtype)
    w2e = _expand_block_diag(w2.astype(jnp.float32), g).astype(matmul_dtype)
    w3e = _expand_block_diag(w3.astype(jnp.float32), g).astype(matmul_dtype)
    b1e = _expand_bias(b1.astype(jnp.float32), g)
    b2e = _expand_bias(b2.astype(jnp.float32), g)
    b3e = _expand_bias(b3.astype(jnp.float32), g)

    # --- batch tile: big tiles (<= 64K samples) so DMA time dwarfs the ~0.35us
    #     per-step overhead, but aim for >= min_steps steps so the pipeline stays
    #     full and the batch axis can split across both TensorCores on v7x. ---
    tr = _round_up(pl.cdiv(rows, min_steps), 8)       # aim for ~min_steps grid steps
    tr = max(tr, min(512, _round_up(rows, 8)))        # floor: >= ~16K samples / step
    tr = min(tr, max_rows_per_tile)                   # cap: 64K samples, VMEM-safe on v7x
    if tr >= rows:
        tr = rows                                     # single block == whole array
    grid = (pl.cdiv(rows, tr),)

    flops = 2 * rows * (gf * gh1 + gh1 * gh2 + gh2 * go)
    bytes_accessed = (xg.size * 4 + rows * go * 4
                      + (w1e.size + w2e.size + w3e.size) * w1e.dtype.itemsize
                      + (b1e.size + b2e.size + b3e.size) * 4)

    out_g = pl.pallas_call(
        _mlp_kernel,
        out_shape=jax.ShapeDtypeStruct((rows, go), jnp.float32),
        grid=grid,
        in_specs=[
            pl.BlockSpec((tr, gf), lambda i: (i, 0)),      # x       : streamed per tile
            pl.BlockSpec((gf, gh1), lambda i: (0, 0)),     # w1e     : VMEM-resident
            pl.BlockSpec((1, gh1), lambda i: (0, 0)),      # b1e
            pl.BlockSpec((gh1, gh2), lambda i: (0, 0)),    # w2e
            pl.BlockSpec((1, gh2), lambda i: (0, 0)),      # b2e
            pl.BlockSpec((gh2, go), lambda i: (0, 0)),     # w3e
            pl.BlockSpec((1, go), lambda i: (0, 0)),       # b3e
        ],
        out_specs=pl.BlockSpec((tr, go), lambda i: (i, 0)),
        compiler_params=pltpu.CompilerParams(
            # "parallel" lets Mosaic shard batch tiles across both TensorCores on
            # v7x; harmless on single-core v5e/v6e.
            dimension_semantics=("parallel",),
        ),
        cost_estimate=pl.CostEstimate(flops=flops, transcendentals=0,
                                      bytes_accessed=bytes_accessed),
    )(xg, w1e, b1e, w2e, b2e, w3e, b3e)

    out = out_g.reshape(Bp, out_feats)     # free reshape: (rows, g*out) -> (Bp, out)
    if Bp != B:
        out = out[:B]                      # only when the input had to be padded
    return out


def init_params(key, inp_feats=4, h1=8, h2=8, out_feats=3):
    """Mirror nn.Linear init: U(-1/sqrt(fan_in), 1/sqrt(fan_in)); W stored (out, in)."""
    ks = jax.random.split(key, 6)

    def lin(kw, kb, fan_in, fan_out):
        bound = 1.0 / jnp.sqrt(float(fan_in))
        w = jax.random.uniform(kw, (fan_out, fan_in), jnp.float32, -bound, bound)
        b = jax.random.uniform(kb, (fan_out,), jnp.float32, -bound, bound)
        return w, b

    w1, b1 = lin(ks[0], ks[1], inp_feats, h1)
    w2, b2 = lin(ks[2], ks[3], h1, h2)
    w3, b3 = lin(ks[4], ks[5], h2, out_feats)
    return {"w1": w1, "b1": b1, "w2": w2, "b2": b2, "w3": w3, "b3": b3}


def reference_forward_f32(x, p):
    """Exact f32 reference (true PyTorch semantics)."""
    hp = jax.lax.Precision.HIGHEST
    h = jnp.maximum(jnp.dot(x, p["w1"].T, precision=hp) + p["b1"], 0.0)
    h = jnp.maximum(jnp.dot(h, p["w2"].T, precision=hp) + p["b2"], 0.0)
    return jnp.dot(h, p["w3"].T, precision=hp) + p["b3"]


def reference_forward_matched(x, p, matmul_dtype=jnp.bfloat16):
    """Reference mirroring the kernel's numerics: bf16 matmul inputs, f32 accumulate."""
    mm = matmul_dtype

    def lin(h, w, b):
        return jnp.dot(h.astype(mm), w.T.astype(mm),
                       preferred_element_type=jnp.float32) + b

    h = jnp.maximum(lin(x, p["w1"], p["b1"]), 0.0)
    h = jnp.maximum(lin(h, p["w2"], p["b2"]), 0.0)
    return lin(h, p["w3"], p["b3"])


if __name__ == "__main__":
    key = jax.random.PRNGKey(0)
    k_p, k_x1, k_x2 = jax.random.split(key, 3)

    INP, H1, H2, OUT = 4, 8, 8, 3
    params = init_params(k_p, INP, H1, H2, OUT)

    cases = [
        # Iris-sized batch; 150 % 32 != 0 exercises the pad/slice edge path.
        (jax.random.uniform(k_x1, (150, INP), jnp.float32, 0.0, 8.0), {}),
        # Larger batch with a small tile cap just to exercise the multi-step
        # pipelined grid; real workloads keep the default 64K-sample tiles.
        (jax.random.uniform(k_x2, (1024, INP), jnp.float32, 0.0, 8.0),
         dict(max_rows_per_tile=8)),
    ]

    for x, kwargs in cases:
        out = jax.block_until_ready(ann_forward(x, params, **kwargs))
        assert out.shape == (x.shape[0], OUT), out.shape

        # Tight check vs a reference that mirrors the kernel's numerics exactly
        # (bf16 matmul inputs, f32 accumulation) -- validates the layout machinery.
        ref_mm = reference_forward_matched(x, params)
        assert jnp.allclose(out, ref_mm, atol=1e-3, rtol=1e-3), "mismatch vs matched ref"

        # Documented looser check vs the exact f32 PyTorch forward: deviation comes
        # only from streaming matmul inputs as bf16 (typically a few 1e-3).
        ref32 = reference_forward_f32(x, params)
        tol = 0.03 * float(jnp.max(jnp.abs(ref32))) + 0.05
        assert float(jnp.max(jnp.abs(out - ref32))) <= tol, "mismatch vs f32 reference"

    print("KERNEL_OK")
</pallas_src>

<mosaic_0001>
module attributes {stable_mosaic.version = 11 : i64} {
  func.func @_mlp_kernel(%arg0: i32, %arg1: memref<5x128xf32, #tpu.memory_space<vmem>>, %arg2: memref<128x256xbf16, #tpu.memory_space<vmem>>, %arg3: memref<1x256xf32, #tpu.memory_space<vmem>>, %arg4: memref<256x256xbf16, #tpu.memory_space<vmem>>, %arg5: memref<1x256xf32, #tpu.memory_space<vmem>>, %arg6: memref<256x96xbf16, #tpu.memory_space<vmem>>, %arg7: memref<1x96xf32, #tpu.memory_space<vmem>>, %arg8: memref<5x96xf32, #tpu.memory_space<vmem>>) attributes {dimension_semantics = [#tpu.dimension_semantics<parallel>], iteration_bounds = array<i64: 1>, scalar_prefetch = 0 : i64, scratch_operands = 0 : i64, tpu.core_type = #tpu.core_type<tc>, window_params = [{transform_indices = @transform_0, window_bounds = array<i64: 5, 128>}, {pipeline_mode = #tpu.pipeline_mode<synchronous>, transform_indices = @transform_1, window_bounds = array<i64: 128, 256>}, {pipeline_mode = #tpu.pipeline_mode<synchronous>, transform_indices = @transform_2, window_bounds = array<i64: 1, 256>}, {pipeline_mode = #tpu.pipeline_mode<synchronous>, transform_indices = @transform_3, window_bounds = array<i64: 256, 256>}, {pipeline_mode = #tpu.pipeline_mode<synchronous>, transform_indices = @transform_4, window_bounds = array<i64: 1, 256>}, {pipeline_mode = #tpu.pipeline_mode<synchronous>, transform_indices = @transform_5, window_bounds = array<i64: 256, 96>}, {pipeline_mode = #tpu.pipeline_mode<synchronous>, transform_indices = @transform_6, window_bounds = array<i64: 1, 96>}, {transform_indices = @transform_7, window_bounds = array<i64: 5, 96>}]} {
    %c0 = arith.constant 0 : index
    %c0_0 = arith.constant 0 : index
    %0 = vector.load %arg1[%c0, %c0_0] : memref<5x128xf32, #tpu.memory_space<vmem>>, vector<5x128xf32>
    %1 = arith.truncf %0 : vector<5x128xf32> to vector<5x128xbf16>
    %c0_1 = arith.constant 0 : index
    %c0_2 = arith.constant 0 : index
    %2 = vector.load %arg2[%c0_1, %c0_2] : memref<128x256xbf16, #tpu.memory_space<vmem>>, vector<128x256xbf16>
    %cst = arith.constant dense<0.000000e+00> : vector<5x256xf32>
    %3 = tpu.matmul %1, %2, %cst {dimension_numbers = #tpu.dot_dimension_numbers<[1], [0], [0], [1], [0, 0, 1, 1], [], []>} : vector<5x128xbf16>, vector<128x256xbf16>, vector<5x256xf32> -> vector<5x256xf32>
    %c0_3 = arith.constant 0 : index
    %c0_4 = arith.constant 0 : index
    %4 = vector.load %arg3[%c0_3, %c0_4] : memref<1x256xf32, #tpu.memory_space<vmem>>, vector<1x256xf32>
    %5 = vector.broadcast %4 : vector<1x256xf32> to vector<5x256xf32>
    %6 = arith.addf %3, %5 : vector<5x256xf32>
    %cst_5 = arith.constant 0.000000e+00 : f32
    %7 = vector.broadcast %cst_5 : f32 to vector<5x256xf32>
    %8 = arith.maximumf %6, %7 : vector<5x256xf32>
    %9 = arith.truncf %8 : vector<5x256xf32> to vector<5x256xbf16>
    %c0_6 = arith.constant 0 : index
    %c0_7 = arith.constant 0 : index
    %10 = vector.load %arg4[%c0_6, %c0_7] : memref<256x256xbf16, #tpu.memory_space<vmem>>, vector<256x256xbf16>
    %cst_8 = arith.constant dense<0.000000e+00> : vector<5x256xf32>
    %11 = tpu.matmul %9, %10, %cst_8 {dimension_numbers = #tpu.dot_dimension_numbers<[1], [0], [0], [1], [0, 0, 1, 1], [], []>} : vector<5x256xbf16>, vector<256x256xbf16>, vector<5x256xf32> -> vector<5x256xf32>
    %c0_9 = arith.constant 0 : index
    %c0_10 = arith.constant 0 : index
    %12 = vector.load %arg5[%c0_9, %c0_10] : memref<1x256xf32, #tpu.memory_space<vmem>>, vector<1x256xf32>
    %13 = vector.broadcast %12 : vector<1x256xf32> to vector<5x256xf32>
    %14 = arith.addf %11, %13 : vector<5x256xf32>
    %cst_11 = arith.constant 0.000000e+00 : f32
    %15 = vector.broadcast %cst_11 : f32 to vector<5x256xf32>
    %16 = arith.maximumf %14, %15 : vector<5x256xf32>
    %17 = arith.truncf %16 : vector<5x256xf32> to vector<5x256xbf16>
    %c0_12 = arith.constant 0 : index
    %c0_13 = arith.constant 0 : index
    %18 = vector.load %arg6[%c0_12, %c0_13] : memref<256x96xbf16, #tpu.memory_space<vmem>>, vector<256x96xbf16>
    %cst_14 = arith.constant dense<0.000000e+00> : vector<5x96xf32>
    %19 = tpu.matmul %17, %18, %cst_14 {dimension_numbers = #tpu.dot_dimension_numbers<[1], [0], [0], [1], [0, 0, 1, 1], [], []>} : vector<5x256xbf16>, vector<256x96xbf16>, vector<5x96xf32> -> vector<5x96xf32>
    %c0_15 = arith.constant 0 : index
    %c0_16 = arith.constant 0 : index
    %20 = vector.load %arg7[%c0_15, %c0_16] : memref<1x96xf32, #tpu.memory_space<vmem>>, vector<1x96xf32>
    %21 = vector.broadcast %20 : vector<1x96xf32> to vector<5x96xf32>
    %22 = arith.addf %19, %21 : vector<5x96xf32>
    %c0_17 = arith.constant 0 : index
    %c0_18 = arith.constant 0 : index
    %23 = vector.load %arg8[%c0_17, %c0_18] : memref<5x96xf32, #tpu.memory_space<vmem>>, vector<5x96xf32>
    tpu.vector_store %arg8[%c0_17, %c0_18], %22 {strides = array<i32>} : memref<5x96xf32, #tpu.memory_space<vmem>>, vector<5x96xf32>,
    return
  }
  func.func @transform_0(%arg0: i32) -> (i32, i32) {
    %c0_i32 = arith.constant 0 : i32
    %c0_i32_0 = arith.constant 0 : i32
    return %arg0, %c0_i32 : i32, i32
  }
  func.func @transform_1(%arg0: i32) -> (i32, i32) {
    %c0_i32 = arith.constant 0 : i32
    %c0_i32_0 = arith.constant 0 : i32
    %c0_i32_1 = arith.constant 0 : i32
    return %c0_i32, %c0_i32_0 : i32, i32
  }
  func.func @transform_2(%arg0: i32) -> (i32, i32) {
    %c0_i32 = arith.constant 0 : i32
    %c0_i32_0 = arith.constant 0 : i32
    %c0_i32_1 = arith.constant 0 : i32
    return %c0_i32, %c0_i32_0 : i32, i32
  }
  func.func @transform_3(%arg0: i32) -> (i32, i32) {
    %c0_i32 = arith.constant 0 : i32
    %c0_i32_0 = arith.constant 0 : i32
    %c0_i32_1 = arith.constant 0 : i32
    return %c0_i32, %c0_i32_0 : i32, i32
  }
  func.func @transform_4(%arg0: i32) -> (i32, i32) {
    %c0_i32 = arith.constant 0 : i32
    %c0_i32_0 = arith.constant 0 : i32
    %c0_i32_1 = arith.constant 0 : i32
    return %c0_i32, %c0_i32_0 : i32, i32
  }
  func.func @transform_5(%arg0: i32) -> (i32, i32) {
    %c0_i32 = arith.constant 0 : i32
    %c0_i32_0 = arith.constant 0 : i32
    %c0_i32_1 = arith.constant 0 : i32
    return %c0_i32, %c0_i32_0 : i32, i32
  }
  func.func @transform_6(%arg0: i32) -> (i32, i32) {
    %c0_i32 = arith.constant 0 : i32
    %c0_i32_0 = arith.constant 0 : i32
    %c0_i32_1 = arith.constant 0 : i32
    return %c0_i32, %c0_i32_0 : i32, i32
  }
  func.func @transform_7(%arg0: i32) -> (i32, i32) {
    %c0_i32 = arith.constant 0 : i32
    %c0_i32_0 = arith.constant 0 : i32
    return %arg0, %c0_i32 : i32, i32
  }
}

</mosaic_0001>

<bundles_post_ra>
// kernel: tpu_custom_call.1
= control target key start
LH: loop header
LB: loop body
LE: loop exit
PB: predicated region body
PF: predicated region fallthrough
CT: control target
= control target key end

     0   :  { %12 = vsyncpa [#allocation3], 0  ;;  %s1021_s0 = inlined_call_operand.vmem [shape: f32[5,128], index: 0, kind: input, shape index: {}]   ;;  %s1022_s1 = inlined_call_operand.vmem [shape: bf16[128,256], index: 1, kind: input, shape index: {}]   ;;  %s1023_s2 = inlined_call_operand.vmem [shape: f32[1,256], index: 2, kind: input, shape index: {}]   ;;  %s1024_s3 = inlined_call_operand.hbm [shape: bf16[256,256], index: 3, kind: input, shape index: {}]   ;;  %s1025_s4 = inlined_call_operand.vmem [shape: f32[1,256], index: 4, kind: input, shape index: {}]   ;;  %s1026_s5 = inlined_call_operand.vmem [shape: bf16[256,96], index: 5, kind: input, shape index: {}]   ;;  %s1027_s6 = inlined_call_operand.vmem [shape: f32[1,96], index: 6, kind: input, shape index: {}]   ;;  %s1028_s7 = inlined_call_operand.hbm [shape: f32[5,96], index: 7, kind: output, shape index: {}]  }
   0x1   :  { %13 = vsyncpa [#allocation4], 0  ;;  %s862_s24 = smov [#allocation2]  }
   0x2   :  { %s25_s25 = sshll.u32 %s862_s24, 4  ;;  %s26_s25 = int_to_ptr.vmem [resolvable:$true] %s25_s25 }
   0x3   :  { %s826_s26 = scalar_lea.vmem %s26_s25, 4096  ;;  %p831_p1 = scmp.lt.s32.totalorder %s26_s25, %s26_s25 }
   0x4   :  { %p827_p0 = scmp.ne.s32.totalorder %s26_s25, %s826_s26  ;;  %p832_p2 = scmp.lt.s32.totalorder %s826_s26, %s826_s26 }
   0x6   :  { %p833_p3 = por %p832_p2, %p831_p1 }
   0x8   :  { %p834_p4 = pnand %p833_p3, %p827_p0 }
   0xa   :  { %837 = shalt.err (!%p834_p4)
}
   0xb   :  { %s863_s27 = smov 128   ;;  %s864_s28 = smov 8  }
   0xc   :  { %31 = dma.hbm_to_vmem [thread:$0]  %s1024_s3, 4096, %s26_s25, [#allocation3], %s863_s27, %s863_s27, %s864_s28  }
   0xd   :  { %858 = dma.done.wait [#allocation3], 4096  }
   0xe   :  { %859 = vsyncadd [#allocation3], 4294963200  ;;  %v865_v0 = vmov 0   ;;  %v730_v1 = vld [vmem:[%s1022_s1 + $0x74] ss:$8 sps:$4 sm:$0xff]   ;;  %v806_v55 = vld [vmem:[%s1026_s5 + $0x68] sm:$0xff]   ;;  %v62_v63 = vlaneseq }
   0xf   :  { %184 = vmatprep.mubr.bf16.mxu0 %v865_v0  ;;  %v732_v2 = vld [vmem:[%s1022_s1 + $0x70] ss:$8 sps:$4 sm:$0xff]   ;;  %152 = vmatprep.subr.bf16.mxu0 %v730_v1  ;;  %v733_v3 = vld [vmem:[%s1022_s1 + $0x64] ss:$8 sps:$4 sm:$0xff]   ;;  %v735_v4 = vld [vmem:[%s1022_s1 + $0x60] ss:$8 sps:$4 sm:$0xff]  }
  0x10   :  { %153 = vmatpush1.bf16.msra.mxu0 %v732_v2  ;;  %v736_v5 = vld [vmem:[%s1022_s1 + $0x54] ss:$8 sps:$4 sm:$0xff]   ;;  %v738_v6 = vld [vmem:[%s1022_s1 + $0x50] ss:$8 sps:$4 sm:$0xff]   ;;  %v739_v7 = vld [vmem:[%s1022_s1 + $0x44] ss:$8 sps:$4 sm:$0xff]  }
  0x11   :  { %154 = vmatprep.subr.bf16.mxu0 %v733_v3  ;;  %v741_v8 = vld [vmem:[%s1022_s1 + $0x40] ss:$8 sps:$4 sm:$0xff]   ;;  %v742_v9 = vld [vmem:[%s1022_s1 + $0x34] ss:$8 sps:$4 sm:$0xff]   ;;  %v756_v11 = vld [vmem:[#allocation2 + $0x70] ss:$8 sps:$4 sm:$0xff]  }
  0x12   :  { %v754_v10 = vld [vmem:[#allocation2 + $0x74] ss:$8 sps:$4 sm:$0xff]   ;;  %v757_v12 = vld [vmem:[#allocation2 + $0x64] ss:$8 sps:$4 sm:$0xff]   ;;  %v744_v13 = vld [vmem:[%s1022_s1 + $0x30] ss:$8 sps:$4 sm:$0xff]  }
  0x13   :  { %401 = vmatprep.subr.bf16.mxu1 %v754_v10  ;;  %v759_v14 = vld [vmem:[#allocation2 + $0x60] ss:$8 sps:$4 sm:$0xff]   ;;  %v760_v15 = vld [vmem:[#allocation2 + $0x54] ss:$8 sps:$4 sm:$0xff]   ;;  %v745_v16 = vld [vmem:[%s1022_s1 + $0x24] ss:$8 sps:$4 sm:$0xff]  }
  0x14   :  { %155 = vmatpush1.bf16.msra.mxu0 %v735_v4  ;;  %402 = vmatpush1.bf16.msra.mxu1 %v756_v11  ;;  %v747_v17 = vld [vmem:[%s1022_s1 + $0x20] ss:$8 sps:$4 sm:$0xff]   ;;  %v762_v18 = vld [vmem:[#allocation2 + $0x50] ss:$8 sps:$4 sm:$0xff]   ;;  %v763_v19 = vld [vmem:[#allocation2 + $0x44] ss:$8 sps:$4 sm:$0xff]  }
  0x15   :  { %156 = vmatprep.subr.bf16.mxu0 %v736_v5  ;;  %403 = vmatprep.subr.bf16.mxu1 %v757_v12  ;;  %v748_v20 = vld [vmem:[%s1022_s1 + $0x14] ss:$8 sps:$4 sm:$0xff]   ;;  %v750_v21 = vld [vmem:[%s1022_s1 + $0x10] ss:$8 sps:$4 sm:$0xff]   ;;  %v765_v22 = vld [vmem:[#allocation2 + $0x40] ss:$8 sps:$4 sm:$0xff]  }
  0x16   :  { %v766_v23 = vld [vmem:[#allocation2 + $0x34] ss:$8 sps:$4 sm:$0xff]   ;;  %v751_v24 = vld [vmem:[%s1022_s1 + $0x4] ss:$8 sps:$4 sm:$0xff]   ;;  %v753_v25 = vld [vmem:[%s1022_s1] ss:$8 sps:$4 sm:$0xff]  }
  0x17   :  { %v42_v26 = vld [vmem:[%s1021_s0] sm:$0x1f]  ;;  %v768_v27 = vld [vmem:[#allocation2 + $0x30] ss:$8 sps:$4 sm:$0xff]   ;;  %v772_v30 = vld [vmem:[#allocation2 + $0x14] ss:$8 sps:$4 sm:$0xff]  }
  0x18   :  { %157 = vmatpush1.bf16.msra.mxu0 %v738_v6  ;;  %404 = vmatpush1.bf16.msra.mxu1 %v759_v14  ;;  %v769_v28 = vld [vmem:[#allocation2 + $0x24] ss:$8 sps:$4 sm:$0xff]   ;;  %v771_v29 = vld [vmem:[#allocation2 + $0x20] ss:$8 sps:$4 sm:$0xff]   ;;  %v43_v31 = vpack.c.bf16 %v42_v26, %v42_v26  ;;  %v774_v32 = vld [vmem:[#allocation2 + $0x10] ss:$8 sps:$4 sm:$0xff]  }
  0x19   :  { %158 = vmatprep.subr.bf16.mxu0 %v739_v7  ;;  %405 = vmatprep.subr.bf16.mxu1 %v760_v15  ;;  %v775_v33 = vld [vmem:[#allocation2 + $0x4] ss:$8 sps:$4 sm:$0xff]   ;;  %v777_v34 = vld [vmem:[#allocation2] ss:$8 sps:$4 sm:$0xff]   ;;  %v778_v35 = vld [vmem:[#allocation2 + $0xf4] ss:$8 sps:$4 sm:$0xff]  }
  0x1a   :  { %v780_v36 = vld [vmem:[#allocation2 + $0xf0] ss:$8 sps:$4 sm:$0xff]   ;;  %v781_v37 = vld [vmem:[#allocation2 + $0xe4] ss:$8 sps:$4 sm:$0xff]   ;;  %v783_v38 = vld [vmem:[#allocation2 + $0xe0] ss:$8 sps:$4 sm:$0xff]  }
  0x1b   :  { %v784_v39 = vld [vmem:[#allocation2 + $0xd4] ss:$8 sps:$4 sm:$0xff]   ;;  %v786_v40 = vld [vmem:[#allocation2 + $0xd0] ss:$8 sps:$4 sm:$0xff]   ;;  %v787_v41 = vld [vmem:[#allocation2 + $0xc4] ss:$8 sps:$4 sm:$0xff]  }
  0x1c   :  { %159 = vmatpush1.bf16.msra.mxu0 %v741_v8  ;;  %406 = vmatpush1.bf16.msra.mxu1 %v762_v18  ;;  %v789_v42 = vld [vmem:[#allocation2 + $0xc0] ss:$8 sps:$4 sm:$0xff]   ;;  %v790_v43 = vld [vmem:[#allocation2 + $0xb4] ss:$8 sps:$4 sm:$0xff]   ;;  %v792_v44 = vld [vmem:[#allocation2 + $0xb0] ss:$8 sps:$4 sm:$0xff]  }
  0x1d   :  { %160 = vmatprep.subr.bf16.mxu0 %v742_v9  ;;  %407 = vmatprep.subr.bf16.mxu1 %v763_v19  ;;  %v793_v45 = vld [vmem:[#allocation2 + $0xa4] ss:$8 sps:$4 sm:$0xff]   ;;  %v795_v46 = vld [vmem:[#allocation2 + $0xa0] ss:$8 sps:$4 sm:$0xff]   ;;  %v796_v47 = vld [vmem:[#allocation2 + $0x94] ss:$8 sps:$4 sm:$0xff]  }
  0x1e   :  { %v798_v48 = vld [vmem:[#allocation2 + $0x90] ss:$8 sps:$4 sm:$0xff]   ;;  %v799_v49 = vld [vmem:[#allocation2 + $0x84] ss:$8 sps:$4 sm:$0xff]   ;;  %v801_v50 = vld [vmem:[#allocation2 + $0x80] ss:$8 sps:$4 sm:$0xff]  }
  0x1f   :  { %v802_v51 = vld [vmem:[%s1026_s5 + $0x78] sm:$0xff]   ;;  %v804_v53 = vld [vmem:[%s1026_s5 + $0x70] sm:$0xff]   ;;  %v807_v56 = vld [vmem:[%s1026_s5 + $0x28] sm:$0xff]   ;;  %v63_v0 = vshrl.u32 %v62_v63, 7  ;;  %vm621_vm0 = vcmask 782336  }
  0x20   :  { %161 = vmatpush1.bf16.msra.mxu0 %v744_v13  ;;  %408 = vmatpush1.bf16.msra.mxu1 %v765_v22  ;;  %v803_v52 = vld [vmem:[%s1026_s5 + $0x38] sm:$0xff]   ;;  %v805_v54 = vld [vmem:[%s1026_s5 + $0x30] sm:$0xff]   ;;  %v808_v57 = vld [vmem:[%s1026_s5 + $0x60] sm:$0xff]  }
  0x21   :  { %162 = vmatprep.subr.bf16.mxu0 %v745_v16  ;;  %409 = vmatprep.subr.bf16.mxu1 %v766_v23  ;;  %v809_v58 = vld [vmem:[%s1026_s5 + $0x20] sm:$0xff]   ;;  %v810_v59 = vld [vmem:[%s1026_s5 + $0x58] sm:$0xff]   ;;  %v812_v61 = vld [vmem:[%s1026_s5 + $0x50] sm:$0xff]   ;;  %v64_v1 = vsub.s32 0, %v63_v0  ;;  %v68_v3 = vsub.s32 1, %v63_v0 }
  0x22   :  { %v811_v60 = vld [vmem:[%s1026_s5 + $0x18] sm:$0xff]   ;;  %v813_v62 = vld [vmem:[%s1026_s5 + $0x10] sm:$0xff]   ;;  %v60_v2 = vld [vmem:[%s1023_s2] sm:$0x3] }
  0x23   :  { %v65_v4 = vrot.slane %v60_v2, %v64_v1  ;;  %v69_v5 = vrot.slane %v60_v2, %v68_v3  ;;  %v814_v16 = vld [vmem:[%s1026_s5 + $0x48] sm:$0xff]   ;;  %v816_v18 = vld [vmem:[%s1026_s5 + $0x40] sm:$0xff]  }
  0x24   :  { %163 = vmatpush1.bf16.msra.mxu0 %v747_v17  ;;  %410 = vmatpush1.bf16.msra.mxu1 %v768_v27  ;;  %v815_v17 = vld [vmem:[%s1026_s5 + $0x8] sm:$0xff]   ;;  %v817_v19 = vld [vmem:[%s1026_s5] sm:$0xff]  }
  0x25   :  { %164 = vmatprep.subr.bf16.mxu0 %v748_v20  ;;  %411 = vmatprep.subr.bf16.mxu1 %v769_v28  ;;  %v229_v20 = vld [vmem:[%s1025_s4] sm:$0x3]  ;;  %s866_s4 = smov [#allocation5]  }
  0x26   :  { %v238_v22 = vrot.slane %v229_v20, %v68_v3  ;;  %s629_s25 = sshll.u32 %s866_s4, 4  ;;  %s630_s25 = int_to_ptr.vmem [resolvable:$true] %s629_s25 }
  0x27   :  { %s838_s26 = scalar_lea.vmem %s630_s25, 128  ;;  %p843_p6 = scmp.lt.s32.totalorder %s630_s25, %s630_s25 }
  0x28   :  { %165 = vmatpush1.bf16.msra.mxu0 %v750_v21  ;;  %412 = vmatpush1.bf16.msra.mxu1 %v771_v29  ;;  %v234_v21 = vrot.slane %v229_v20, %v64_v1  ;;  %p839_p5 = scmp.ne.s32.totalorder %s630_s25, %s838_s26  ;;  %p844_p7 = scmp.lt.s32.totalorder %s838_s26, %s838_s26 }
  0x29   :  { %166 = vmatprep.subr.bf16.mxu0 %v751_v24  ;;  %413 = vmatprep.subr.bf16.mxu1 %v772_v30 }
  0x2a   :  { %p845_p8 = por %p844_p7, %p843_p6 }
  0x2c   :  { %167 = vmatpush1.bf16.msra.mxu0 %v753_v25  ;;  %414 = vmatpush1.bf16.msra.mxu1 %v774_v32  ;;  %p846_p9 = pnand %p845_p8, %p839_p5 }
  0x2d   :  { %415 = vmatprep.subr.bf16.mxu1 %v775_v33  ;;  %703 = vmatprep.subr.bf16.mxu0 %v802_v51 }
  0x2f   :  { %185 = vmatmul.mubr.bf16.vlgmr.msra.gmra.mxu0 %v43_v31 }
  0x30   :  { %416 = vmatpush1.bf16.msra.mxu1 %v777_v34  ;;  %704 = vmatpush3.bf16.msra.mxu0 %v803_v52  ;;  %v686_v34 = vld [vmem:[%s1027_s6] ss:$0 sm:$0xff] }
  0x31   :  { %417 = vmatprep.subr.bf16.mxu1 %v778_v35  ;;  %705 = vmatprep.subr.bf16.mxu0 %v804_v53 }
  0x34   :  { %418 = vmatpush2.bf16.msra.mxu1 %v780_v36  ;;  %706 = vmatpush3.bf16.msra.mxu0 %v805_v54 }
  0x35   :  { %419 = vmatprep.subr.bf16.mxu1 %v781_v37  ;;  %707 = vmatprep.subr.bf16.mxu0 %v806_v55 }
  0x38   :  { %420 = vmatpush2.bf16.msra.mxu1 %v783_v38  ;;  %708 = vmatpush3.bf16.msra.mxu0 %v807_v56 }
  0x39   :  { %421 = vmatprep.subr.bf16.mxu1 %v784_v39  ;;  %709 = vmatprep.subr.bf16.mxu0 %v808_v57 }
  0x3c   :  { %422 = vmatpush2.bf16.msra.mxu1 %v786_v40  ;;  %710 = vmatpush3.bf16.msra.mxu0 %v809_v58 }
  0x3d   :  { %423 = vmatprep.subr.bf16.mxu1 %v787_v41  ;;  %711 = vmatprep.subr.bf16.mxu0 %v810_v59 }
  0x40   :  { %424 = vmatpush2.bf16.msra.mxu1 %v789_v42  ;;  %712 = vmatpush3.bf16.msra.mxu0 %v811_v60 }
  0x41   :  { %425 = vmatprep.subr.bf16.mxu1 %v790_v43  ;;  %713 = vmatprep.subr.bf16.mxu0 %v812_v61 }
  0x44   :  { %426 = vmatpush2.bf16.msra.mxu1 %v792_v44  ;;  %714 = vmatpush3.bf16.msra.mxu0 %v813_v62 }
  0x45   :  { %427 = vmatprep.subr.bf16.mxu1 %v793_v45  ;;  %715 = vmatprep.subr.bf16.mxu0 %v814_v16 }
  0x48   :  { %428 = vmatpush2.bf16.msra.mxu1 %v795_v46  ;;  %716 = vmatpush3.bf16.msra.mxu0 %v815_v17 }
  0x49   :  { %429 = vmatprep.subr.bf16.mxu1 %v796_v47  ;;  %717 = vmatprep.subr.bf16.mxu0 %v816_v18 }
  0x4c   :  { %430 = vmatpush2.bf16.msra.mxu1 %v798_v48  ;;  %718 = vmatpush3.bf16.msra.mxu0 %v817_v19 }
  0x4d   :  { %431 = vmatprep.subr.bf16.mxu1 %v799_v49 }
  0x50   :  { %432 = vmatpush2.bf16.msra.mxu1 %v801_v50 }
  0xef   :  { %v186_v6 = vpop.f32.mrf.mxu0 }
  0xf0   :  { %v187_v7 = vadd.f32 %v186_v6, %v65_v4 }
  0xf1   :  { %v188_v8 = vpop.f32.mrf.mxu0 }
  0xf2   :  { %v189_v9 = vadd.f32 %v188_v8, %v69_v5  ;;  %v193_v10 = vmax.f32 %v187_v7, 0.0 }
  0xf3   :  { %v190_v11 = vpop.f32.mrf.mxu0 }
  0xf4   :  { %v194_v12 = vmax.f32 %v189_v9, 0.0  ;;  %v195_v15 = vpack.c.bf16 %v193_v10, %v193_v10 }
  0xf5   :  { %v191_v13 = vpop.f32.mrf.mxu0 }
  0xf6   :  { %v196_v14 = vpack.c.bf16 %v194_v12, %v194_v12 }
  0xf8   :  { %433 = vmatprep.mubr.bf16.mxu1 %v196_v14 }
  0xf9   :  { %434 = vmatmul.mubr.bf16.vlgmr.msra.gmra.mxu1 %v195_v15 }
 0x1b9   :  { %v435_v23 = vpop.f32.mrf.mxu1 }
 0x1ba   :  { %v436_v24 = vadd.f32 %v435_v23, %v234_v21 }
 0x1bb   :  { %v437_v25 = vpop.f32.mrf.mxu1 }
 0x1bc   :  { %v438_v26 = vadd.f32 %v437_v25, %v238_v22  ;;  %v442_v27 = vmax.f32 %v436_v24, 0.0 }
 0x1bd   :  { %v439_v28 = vpop.f32.mrf.mxu1 }
 0x1be   :  { %v443_v29 = vmax.f32 %v438_v26, 0.0  ;;  %v444_v32 = vpack.c.bf16 %v442_v27, %v442_v27 }
 0x1bf   :  { %v440_v30 = vpop.f32.mrf.mxu1 }
 0x1c0   :  { %v445_v31 = vpack.c.bf16 %v443_v29, %v443_v29 }
 0x1c2   :  { %613 = vmatprep.mubr.bf16.mxu0 %v445_v31 }
 0x1c3   :  { %614 = vmatmul.mubr.bf16.vlgmr.msra.gmra.mxu0 %v444_v32 }
 0x283   :  { %v719_v33 = vpop.f32.mrf.mxu0 }
 0x285   :  { %v720_v35 = vpop.f32.mrf.mxu0 }
 0x286   :  { %v721_v36 = vadd.f32 %v720_v35, %v719_v33 }
 0x287   :  { %v722_v37 = vpop.f32.mrf.mxu0 }
 0x288   :  { %v616_v38 = vadd.f32 %v721_v36, %v686_v34 }
 0x289   :  { %v723_v39 = vpop.f32.mrf.mxu0 }
 0x28a   :  { %622 = vst.msk [vmem:[#allocation5] sm:$0x1f] %vm621_vm0, %v616_v38 }
 0x28b   :  { %849 = shalt.err (!%p846_p9)
}
 0x28c   :  { %632 = dma.vmem_to_hbm [thread:$0]  %s630_s25, 128, %s1028_s7, [#allocation4]  }
 0x28d   :  { %860 = dma.done.wait [#allocation4], 128  }
 0x28e   :  { %861 = vsyncadd [#allocation4], 4294967168 }
 0x28f   :  { %636 = vsyncpa [#allocation3], 1 }
 0x290   :  { %637 = vsyncpa [#allocation4], 1 }

</bundles_post_ra>
